<compile_context>
chip_gen: v6e
topology: v6e:2x2x1
jax: 0.10.0
libtpu: 0.0.40
codegen_flags: <defaults>
</compile_context>

<pallas_src>
import functools

import jax
import jax.numpy as jnp
from jax.experimental import pallas as pl
from jax.experimental.pallas import tpu as pltpu


def _kgcn_kernel(user_ref, item_ref, nent_ref, nrel_ref, *rest, apply_dropout):
    if apply_dropout:
        drop_ref, wt_ref, b_ref, out_ref = rest
    else:
        wt_ref, b_ref, out_ref = rest

    u = user_ref[...]          # (TB, D)
    rel = nrel_ref[...]        # (TB, N, D)
    ent = nent_ref[...]        # (TB, N, D)

    # user-relation attention scores, softmax over the neighbor axis
    scores = jnp.sum(u[:, None, :] * rel, axis=2)                # (TB, N)
    scores = scores - jnp.max(scores, axis=-1, keepdims=True)
    es = jnp.exp(scores)
    attn = es / jnp.sum(es, axis=-1, keepdims=True)              # (TB, N)

    # weighted sum of neighbor entity embeddings
    neigh_vec = jnp.sum(attn[:, :, None] * ent, axis=1)          # (TB, D)

    # aggregator_method == 'sum'
    out = item_ref[...] + neigh_vec                              # (TB, D)

    if apply_dropout:
        # drop_ref already holds keep_mask / (1 - p)
        out = out * drop_ref[...]

    # linear layer y = x @ W_t + b (W pre-transposed in wrapper), then ReLU
    y = jnp.dot(out, wt_ref[...], preferred_element_type=jnp.float32) + b_ref[...]
    out_ref[...] = jnp.maximum(y, 0.0).astype(out_ref.dtype)


def _pad_rows(x, rows):
    b = x.shape[0]
    if b == rows:
        return x
    pad = [(0, rows - b)] + [(0, 0)] * (x.ndim - 1)
    return jnp.pad(x, pad)


def kgcn_pallas(user_emb, item_emb, neigh_ent, neigh_rel, W, b, *,
                drop_scale=None, block_rows=2048):
    """Fused KGCN neighbor-aggregation + linear + ReLU.

    drop_scale: optional (B, D) float32 tensor equal to keep_mask/(1-p); when
    None, no dropout is applied (evaluation mode).
    """
    B, D = user_emb.shape
    N = neigh_ent.shape[1]
    apply_dropout = drop_scale is not None

    # Batch tile: multiple of 8 sublanes, padded batch so the grid tiles evenly.
    tb = min(block_rows, B)
    tb = max(8, ((tb + 7) // 8) * 8)
    b_pad = tb * pl.cdiv(B, tb)

    user_p = _pad_rows(user_emb, b_pad)
    item_p = _pad_rows(item_emb, b_pad)
    nent_p = _pad_rows(neigh_ent, b_pad)
    nrel_p = _pad_rows(neigh_rel, b_pad)

    W_t = W.T                       # (D_in, D_out): no in-kernel transpose
    b2 = b.reshape(1, D)

    row2 = pl.BlockSpec((tb, D), lambda i: (i, 0))
    row3 = pl.BlockSpec((tb, N, D), lambda i: (i, 0, 0))
    w_spec = pl.BlockSpec((D, D), lambda i: (0, 0))      # VMEM-resident
    b_spec = pl.BlockSpec((1, D), lambda i: (0, 0))      # VMEM-resident

    in_specs = [row2, row2, row3, row3]
    args = [user_p, item_p, nent_p, nrel_p]
    if apply_dropout:
        in_specs.append(row2)
        args.append(_pad_rows(drop_scale.astype(jnp.float32), b_pad))
    in_specs += [w_spec, b_spec]
    args += [W_t, b2]

    kernel = functools.partial(_kgcn_kernel, apply_dropout=apply_dropout)
    out = pl.pallas_call(
        kernel,
        out_shape=jax.ShapeDtypeStruct((b_pad, D), jnp.float32),
        grid=(b_pad // tb,),
        in_specs=in_specs,
        out_specs=row2,
        compiler_params=pltpu.CompilerParams(
            dimension_semantics=("parallel",),
            vmem_limit_bytes=32 * 1024 * 1024),
    )(*args)
    return out[:B]


def embed_maxnorm(table, idx, max_norm=1.0):
    """nn.Embedding(..., max_norm=1) lookup: gather + renorm rows with ||e|| > 1."""
    e = table[idx]
    norm = jnp.sqrt(jnp.sum(e * e, axis=-1, keepdims=True))
    scale = jnp.where(norm > max_norm, max_norm / (norm + 1e-7), 1.0)
    return e * scale


def kgcn_forward(users, items, params, adj_entity, adj_relation, *,
                 is_evaluate=False, drop_rate=0.5, rng=None):
    """Returns (user_embeddings, out_item_embeddings), matching KGCN.forward."""
    user_emb = embed_maxnorm(params["user_emb"], users)          # (B, D)
    item_emb = embed_maxnorm(params["ent_emb"], items)           # (B, D)
    # TODO(synk): fuse these (B, N, D) gathers into the kernel via scalar-prefetched
    # neighbor-id tables + DMA row-gather to halve HBM traffic on the hot path.
    neigh_ent = embed_maxnorm(params["ent_emb"], adj_entity[items])   # (B, N, D)
    neigh_rel = embed_maxnorm(params["rel_emb"], adj_relation[items])  # (B, N, D)

    drop_scale = None
    if (not is_evaluate) and drop_rate > 0.0:
        # TODO(synk): in-kernel pltpu.prng_seed/prng_random_bits (seed via scalar
        # prefetch + program_id mix) would avoid this extra (B, D) read, but that
        # primitive does not lower under interpret mode.
        if rng is None:
            rng = jax.random.PRNGKey(0)
        keep = jax.random.bernoulli(rng, 1.0 - drop_rate, item_emb.shape)
        drop_scale = keep.astype(jnp.float32) / (1.0 - drop_rate)

    out_item = kgcn_pallas(
        user_emb, item_emb, neigh_ent, neigh_rel,
        params["W"], params["b"], drop_scale=drop_scale)
    return user_emb, out_item


def _kgcn_reference_eval(user_emb, item_emb, neigh_ent, neigh_rel, W, b):
    """Pure-JAX reference (evaluation mode, no dropout) for correctness checks."""
    scores = jnp.sum(user_emb[:, None, :] * neigh_rel, axis=2)
    attn = jax.nn.softmax(scores, axis=-1)
    neigh_vec = jnp.sum(attn[:, :, None] * neigh_ent, axis=1)
    out = item_emb + neigh_vec
    return jnp.maximum(out @ W.T + b, 0.0)


if __name__ == "__main__":
    # Small, deterministic synthetic setup
    n_users, n_entitys, n_relations = 10, 20, 5
    n_neighbors, e_dim, batch = 8, 16, 8

    key = jax.random.PRNGKey(0)
    k_u, k_e, k_r, k_w, k_b, k_ae, k_ar, k_users, k_items, k_drop = (
        jax.random.split(key, 10))

    params = {
        # nn.Embedding init ~ N(0, 1)
        "user_emb": jax.random.normal(k_u, (n_users, e_dim), jnp.float32),
        "ent_emb": jax.random.normal(k_e, (n_entitys, e_dim), jnp.float32),
        "rel_emb": jax.random.normal(k_r, (n_relations, e_dim), jnp.float32),
        # nn.Linear init ~ U(-1/sqrt(in), 1/sqrt(in)); aggregator='sum' -> in = e_dim
        "W": jax.random.uniform(k_w, (e_dim, e_dim), jnp.float32,
                                -1.0 / e_dim ** 0.5, 1.0 / e_dim ** 0.5),
        "b": jax.random.uniform(k_b, (e_dim,), jnp.float32,
                                -1.0 / e_dim ** 0.5, 1.0 / e_dim ** 0.5),
    }

    # adjacency tables: for each entity, n_neighbors entity ids / relation ids
    adj_entity = jax.random.randint(k_ae, (n_entitys, n_neighbors), 0, n_entitys,
                                    dtype=jnp.int32)
    adj_relation = jax.random.randint(k_ar, (n_entitys, n_neighbors), 0, n_relations,
                                      dtype=jnp.int32)

    users = jax.random.randint(k_users, (batch,), 0, n_users, dtype=jnp.int32)
    items = jax.random.randint(k_items, (batch,), 0, n_entitys, dtype=jnp.int32)

    # Training mode (dropout active)
    user_tr, item_tr = kgcn_forward(
        users, items, params, adj_entity, adj_relation,
        is_evaluate=False, drop_rate=0.5, rng=k_drop)

    # Evaluation mode (no dropout) — compare against pure-JAX reference
    user_ev, item_ev = kgcn_forward(
        users, items, params, adj_entity, adj_relation, is_evaluate=True)

    ue = embed_maxnorm(params["user_emb"], users)
    ie = embed_maxnorm(params["ent_emb"], items)
    ne = embed_maxnorm(params["ent_emb"], adj_entity[items])
    nr = embed_maxnorm(params["rel_emb"], adj_relation[items])
    ref = _kgcn_reference_eval(ue, ie, ne, nr, params["W"], params["b"])

    jax.block_until_ready((user_tr, item_tr, user_ev, item_ev, ref))

    assert user_tr.shape == (batch, e_dim)
    assert item_tr.shape == (batch, e_dim)
    assert item_ev.shape == (batch, e_dim)
    assert jnp.allclose(item_ev, ref, rtol=1e-5, atol=1e-5), "mismatch vs reference"
    print("KERNEL_OK")
</pallas_src>

<mosaic_0001>
module attributes {stable_mosaic.version = 11 : i64} {
  func.func @_kgcn_kernel(%arg0: i32, %arg1: memref<8x16xf32, #tpu.memory_space<vmem>>, %arg2: memref<8x16xf32, #tpu.memory_space<vmem>>, %arg3: memref<8x8x16xf32, #tpu.memory_space<vmem>>, %arg4: memref<8x8x16xf32, #tpu.memory_space<vmem>>, %arg5: memref<8x16xf32, #tpu.memory_space<vmem>>, %arg6: memref<16x16xf32, #tpu.memory_space<vmem>>, %arg7: memref<1x16xf32, #tpu.memory_space<vmem>>, %arg8: memref<8x16xf32, #tpu.memory_space<vmem>>) attributes {dimension_semantics = [#tpu.dimension_semantics<parallel>], iteration_bounds = array<i64: 1>, scalar_prefetch = 0 : i64, scratch_operands = 0 : i64, tpu.core_type = #tpu.core_type<tc>, window_params = [{transform_indices = @transform_0, window_bounds = array<i64: 8, 16>}, {transform_indices = @transform_1, window_bounds = array<i64: 8, 16>}, {transform_indices = @transform_2, window_bounds = array<i64: 8, 8, 16>}, {transform_indices = @transform_3, window_bounds = array<i64: 8, 8, 16>}, {transform_indices = @transform_4, window_bounds = array<i64: 8, 16>}, {pipeline_mode = #tpu.pipeline_mode<synchronous>, transform_indices = @transform_5, window_bounds = array<i64: 16, 16>}, {pipeline_mode = #tpu.pipeline_mode<synchronous>, transform_indices = @transform_6, window_bounds = array<i64: 1, 16>}, {transform_indices = @transform_7, window_bounds = array<i64: 8, 16>}]} {
    %c0 = arith.constant 0 : index
    %c0_0 = arith.constant 0 : index
    %0 = vector.load %arg1[%c0, %c0_0] : memref<8x16xf32, #tpu.memory_space<vmem>>, vector<8x16xf32>
    %c0_1 = arith.constant 0 : index
    %c0_2 = arith.constant 0 : index
    %c0_3 = arith.constant 0 : index
    %1 = vector.load %arg4[%c0_1, %c0_2, %c0_3] : memref<8x8x16xf32, #tpu.memory_space<vmem>>, vector<8x8x16xf32>
    %c0_4 = arith.constant 0 : index
    %c0_5 = arith.constant 0 : index
    %c0_6 = arith.constant 0 : index
    %2 = vector.load %arg3[%c0_4, %c0_5, %c0_6] : memref<8x8x16xf32, #tpu.memory_space<vmem>>, vector<8x8x16xf32>
    %3 = vector.shape_cast %0 : vector<8x16xf32> to vector<8x1x16xf32>
    %4 = vector.broadcast %3 : vector<8x1x16xf32> to vector<8x8x16xf32>
    %5 = arith.mulf %4, %1 : vector<8x8x16xf32>
    %cst = arith.constant dense<0.000000e+00> : vector<8x8xf32>
    %6 = vector.multi_reduction <add>, %5, %cst [2] : vector<8x8x16xf32> to vector<8x8xf32>
    %cst_7 = arith.constant dense<0xFF800000> : vector<8xf32>
    %7 = vector.multi_reduction <maximumf>, %6, %cst_7 [1] : vector<8x8xf32> to vector<8xf32>
    %8 = vector.shape_cast %7 : vector<8xf32> to vector<8x1xf32>
    %9 = vector.broadcast %8 : vector<8x1xf32> to vector<8x8xf32>
    %10 = arith.subf %6, %9 : vector<8x8xf32>
    %11 = math.exp %10 : vector<8x8xf32>
    %cst_8 = arith.constant dense<0.000000e+00> : vector<8xf32>
    %12 = vector.multi_reduction <add>, %11, %cst_8 [1] : vector<8x8xf32> to vector<8xf32>
    %13 = vector.shape_cast %12 : vector<8xf32> to vector<8x1xf32>
    %14 = vector.broadcast %13 : vector<8x1xf32> to vector<8x8xf32>
    %15 = arith.divf %11, %14 : vector<8x8xf32>
    %16 = vector.shape_cast %15 : vector<8x8xf32> to vector<8x8x1xf32>
    %17 = vector.broadcast %16 : vector<8x8x1xf32> to vector<8x8x16xf32>
    %18 = arith.mulf %17, %2 : vector<8x8x16xf32>
    %cst_9 = arith.constant dense<0.000000e+00> : vector<8x16xf32>
    %19 = vector.multi_reduction <add>, %18, %cst_9 [1] : vector<8x8x16xf32> to vector<8x16xf32>
    %c0_10 = arith.constant 0 : index
    %c0_11 = arith.constant 0 : index
    %20 = vector.load %arg2[%c0_10, %c0_11] : memref<8x16xf32, #tpu.memory_space<vmem>>, vector<8x16xf32>
    %21 = arith.addf %20, %19 : vector<8x16xf32>
    %c0_12 = arith.constant 0 : index
    %c0_13 = arith.constant 0 : index
    %22 = vector.load %arg5[%c0_12, %c0_13] : memref<8x16xf32, #tpu.memory_space<vmem>>, vector<8x16xf32>
    %23 = arith.mulf %21, %22 : vector<8x16xf32>
    %c0_14 = arith.constant 0 : index
    %c0_15 = arith.constant 0 : index
    %24 = vector.load %arg6[%c0_14, %c0_15] : memref<16x16xf32, #tpu.memory_space<vmem>>, vector<16x16xf32>
    %cst_16 = arith.constant dense<0.000000e+00> : vector<8x16xf32>
    %25 = tpu.matmul %23, %24, %cst_16 {dimension_numbers = #tpu.dot_dimension_numbers<[1], [0], [0], [1], [0, 0, 1, 1], [], []>} : vector<8x16xf32>, vector<16x16xf32>, vector<8x16xf32> -> vector<8x16xf32>
    %c0_17 = arith.constant 0 : index
    %c0_18 = arith.constant 0 : index
    %26 = vector.load %arg7[%c0_17, %c0_18] : memref<1x16xf32, #tpu.memory_space<vmem>>, vector<1x16xf32>
    %27 = vector.broadcast %26 : vector<1x16xf32> to vector<8x16xf32>
    %28 = arith.addf %25, %27 : vector<8x16xf32>
    %cst_19 = arith.constant 0.000000e+00 : f32
    %29 = vector.broadcast %cst_19 : f32 to vector<8x16xf32>
    %30 = arith.maximumf %28, %29 : vector<8x16xf32>
    %c0_20 = arith.constant 0 : index
    %c0_21 = arith.constant 0 : index
    %31 = vector.load %arg8[%c0_20, %c0_21] : memref<8x16xf32, #tpu.memory_space<vmem>>, vector<8x16xf32>
    tpu.vector_store %arg8[%c0_20, %c0_21], %30 {strides = array<i32>} : memref<8x16xf32, #tpu.memory_space<vmem>>, vector<8x16xf32>,
    return
  }
  func.func @transform_0(%arg0: i32) -> (i32, i32) {
    %c0_i32 = arith.constant 0 : i32
    %c0_i32_0 = arith.constant 0 : i32
    return %arg0, %c0_i32 : i32, i32
  }
  func.func @transform_1(%arg0: i32) -> (i32, i32) {
    %c0_i32 = arith.constant 0 : i32
    %c0_i32_0 = arith.constant 0 : i32
    return %arg0, %c0_i32 : i32, i32
  }
  func.func @transform_2(%arg0: i32) -> (i32, i32, i32) {
    %c0_i32 = arith.constant 0 : i32
    %c0_i32_0 = arith.constant 0 : i32
    %c0_i32_1 = arith.constant 0 : i32
    return %arg0, %c0_i32, %c0_i32_0 : i32, i32, i32
  }
  func.func @transform_3(%arg0: i32) -> (i32, i32, i32) {
    %c0_i32 = arith.constant 0 : i32
    %c0_i32_0 = arith.constant 0 : i32
    %c0_i32_1 = arith.constant 0 : i32
    return %arg0, %c0_i32, %c0_i32_0 : i32, i32, i32
  }
  func.func @transform_4(%arg0: i32) -> (i32, i32) {
    %c0_i32 = arith.constant 0 : i32
    %c0_i32_0 = arith.constant 0 : i32
    return %arg0, %c0_i32 : i32, i32
  }
  func.func @transform_5(%arg0: i32) -> (i32, i32) {
    %c0_i32 = arith.constant 0 : i32
    %c0_i32_0 = arith.constant 0 : i32
    %c0_i32_1 = arith.constant 0 : i32
    return %c0_i32, %c0_i32_0 : i32, i32
  }
  func.func @transform_6(%arg0: i32) -> (i32, i32) {
    %c0_i32 = arith.constant 0 : i32
    %c0_i32_0 = arith.constant 0 : i32
    %c0_i32_1 = arith.constant 0 : i32
    return %c0_i32, %c0_i32_0 : i32, i32
  }
  func.func @transform_7(%arg0: i32) -> (i32, i32) {
    %c0_i32 = arith.constant 0 : i32
    %c0_i32_0 = arith.constant 0 : i32
    return %arg0, %c0_i32 : i32, i32
  }
}

</mosaic_0001>

<bundles_post_ra>
// kernel: tpu_custom_call.1
= control target key start
LH: loop header
LB: loop body
LE: loop exit
PB: predicated region body
PF: predicated region fallthrough
CT: control target
= control target key end

     0   :  { %12 = vsyncpa [#allocation3], 0  ;;  %s1162_s0 = inlined_call_operand.hbm [shape: f32[8,16], index: 0, kind: input, shape index: {}]   ;;  %s1163_s1 = inlined_call_operand.hbm [shape: f32[8,16], index: 1, kind: input, shape index: {}]   ;;  %s1164_s2 = inlined_call_operand.hbm [shape: f32[8,8,16], index: 2, kind: input, shape index: {}]   ;;  %s1165_s3 = inlined_call_operand.hbm [shape: f32[8,8,16], index: 3, kind: input, shape index: {}]   ;;  %s1166_s4 = inlined_call_operand.hbm [shape: f32[8,16], index: 4, kind: input, shape index: {}]   ;;  %s1167_s5 = inlined_call_operand.hbm [shape: f32[16,16], index: 5, kind: input, shape index: {}]   ;;  %s1168_s6 = inlined_call_operand.vmem [shape: f32[1,16], index: 6, kind: input, shape index: {}]   ;;  %s1169_s7 = inlined_call_operand.hbm [shape: f32[8,16], index: 7, kind: output, shape index: {}]  }
   0x1   :  { %13 = vsyncpa [#allocation6], 0 }
   0x2   :  { %14 = vsyncpa [#allocation9], 0 }
   0x3   :  { %15 = vsyncpa [#allocation12], 0 }
   0x4   :  { %16 = vsyncpa [#allocation4], 0  ;;  %s937_s24 = smov [#allocation5]  }
   0x5   :  { %s33_s25 = sshll.u32 %s937_s24, 4  ;;  %s34_s25 = int_to_ptr.vmem [resolvable:$true] %s33_s25 }
   0x6   :  { %s795_s26 = scalar_lea.vmem %s34_s25, 128  ;;  %p800_p1 = scmp.lt.s32.totalorder %s34_s25, %s34_s25 }
   0x7   :  { %p796_p0 = scmp.ne.s32.totalorder %s34_s25, %s795_s26  ;;  %p801_p2 = scmp.lt.s32.totalorder %s795_s26, %s795_s26 }
   0x9   :  { %p802_p3 = por %p801_p2, %p800_p1 }
   0xb   :  { %p803_p4 = pnand %p802_p3, %p796_p0 }
   0xd   :  { %806 = shalt.err (!%p803_p4)
}
   0xe   :  { %36 = dma.hbm_to_vmem [thread:$0]  %s1163_s1, 128, %s34_s25, [#allocation6]  }
   0xf   :  { %s938_s29 = smov [#allocation8]   ;;  %s939_s8 = smov [#allocation2]  }
  0x10   :  { %s54_s30 = sshll.u32 %s938_s29, 4  ;;  %s23_s9 = sshll.u32 %s939_s8, 4  ;;  %s55_s30 = int_to_ptr.vmem [resolvable:$true] %s54_s30  ;;  %s24_s9 = int_to_ptr.vmem [resolvable:$true] %s23_s9 }
  0x11   :  { %s815_s10 = scalar_lea.vmem %s55_s30, 1024  ;;  %p820_p6 = scmp.lt.s32.totalorder %s55_s30, %s55_s30 }
  0x12   :  { %p816_p5 = scmp.ne.s32.totalorder %s55_s30, %s815_s10  ;;  %p821_p7 = scmp.lt.s32.totalorder %s815_s10, %s815_s10 }
  0x14   :  { %p822_p8 = por %p821_p7, %p820_p6 }
  0x16   :  { %p823_p9 = pnand %p822_p8, %p816_p5 }
  0x18   :  { %826 = shalt.err (!%p823_p9)
}
  0x19   :  { %s940_s11 = smov 128   ;;  %s941_s12 = smov 8  }
  0x1a   :  { %60 = dma.hbm_to_vmem [thread:$0]  %s1165_s3, 1024, %s55_s30, [#allocation9], %s940_s11, %s940_s11, %s941_s12  }
  0x1b   :  { %s835_s1 = scalar_lea.vmem %s24_s9, 128  ;;  %p840_p11 = scmp.lt.s32.totalorder %s24_s9, %s24_s9 }
  0x1c   :  { %p836_p10 = scmp.ne.s32.totalorder %s24_s9, %s835_s1  ;;  %p841_p12 = scmp.lt.s32.totalorder %s835_s1, %s835_s1 }
  0x1e   :  { %p842_p13 = por %p841_p12, %p840_p11 }
  0x20   :  { %p843_p0 = pnand %p842_p13, %p836_p10 }
  0x22   :  { %846 = shalt.err (!%p843_p0)
}
  0x23   :  { %26 = dma.hbm_to_vmem [thread:$0]  %s1162_s0, 128, %s24_s9, [#allocation3]  }
  0x24   :  { %s942_s17 = smov [#allocation7]   ;;  %s943_s19 = smov [#allocation10]  }
  0x25   :  { %s42_s18 = sshll.u32 %s942_s17, 4  ;;  %s67_s20 = sshll.u32 %s943_s19, 4  ;;  %s43_s18 = int_to_ptr.vmem [resolvable:$true] %s42_s18  ;;  %s68_s20 = int_to_ptr.vmem [resolvable:$true] %s67_s20 }
  0x26   :  { %s855_s21 = scalar_lea.vmem %s43_s18, 1024  ;;  %p860_p2 = scmp.lt.s32.totalorder %s43_s18, %s43_s18 }
  0x27   :  { %p856_p1 = scmp.ne.s32.totalorder %s43_s18, %s855_s21  ;;  %p861_p3 = scmp.lt.s32.totalorder %s855_s21, %s855_s21 }
  0x29   :  { %p862_p4 = por %p861_p3, %p860_p2 }
  0x2b   :  { %p863_p5 = pnand %p862_p4, %p856_p1 }
  0x2d   :  { %866 = shalt.err (!%p863_p5)
}
  0x2e   :  { %48 = dma.hbm_to_vmem [thread:$0]  %s1164_s2, 1024, %s43_s18, [#allocation6], %s940_s11, %s940_s11, %s941_s12  }
  0x2f   :  { %s875_s0 = scalar_lea.vmem %s68_s20, 128  ;;  %p880_p7 = scmp.lt.s32.totalorder %s68_s20, %s68_s20 }
  0x30   :  { %p876_p6 = scmp.ne.s32.totalorder %s68_s20, %s875_s0  ;;  %p881_p8 = scmp.lt.s32.totalorder %s875_s0, %s875_s0 }
  0x32   :  { %p882_p9 = por %p881_p8, %p880_p7 }
  0x34   :  { %p883_p10 = pnand %p882_p9, %p876_p6 }
  0x36   :  { %886 = shalt.err (!%p883_p10)
}
  0x37   :  { %70 = dma.hbm_to_vmem [thread:$0]  %s1166_s4, 128, %s68_s20, [#allocation9]  }
  0x38   :  { %s944_s25 = smov [#allocation11]  }
  0x39   :  { %s76_s26 = sshll.u32 %s944_s25, 4  ;;  %s77_s26 = int_to_ptr.vmem [resolvable:$true] %s76_s26 }
  0x3a   :  { %s895_s27 = scalar_lea.vmem %s77_s26, 256  ;;  %p900_p12 = scmp.lt.s32.totalorder %s77_s26, %s77_s26 }
  0x3b   :  { %p896_p11 = scmp.ne.s32.totalorder %s77_s26, %s895_s27  ;;  %p901_p13 = scmp.lt.s32.totalorder %s895_s27, %s895_s27 }
  0x3d   :  { %p902_p0 = por %p901_p13, %p900_p12 }
  0x3f   :  { %p903_p1 = pnand %p902_p0, %p896_p11 }
  0x41   :  { %906 = shalt.err (!%p903_p1)
}
  0x42   :  { %82 = dma.hbm_to_vmem [thread:$0]  %s1167_s5, 256, %s77_s26, [#allocation12], %s940_s11, %s940_s11, %s941_s12  }
  0x43   :  { %927 = dma.done.wait [#allocation3], 128  }
  0x44   :  { %928 = vsyncadd [#allocation3], 4294967168 }
  0x45   :  { %929 = dma.done.wait [#allocation6], 1152  }
  0x46   :  { %930 = vsyncadd [#allocation6], 4294966144 }
  0x47   :  { %931 = dma.done.wait [#allocation9], 1152  }
  0x48   :  { %932 = vsyncadd [#allocation9], 4294966144 }
  0x49   :  { %933 = dma.done.wait [#allocation12], 256  }
  0x4a   :  { %934 = vsyncadd [#allocation12], 4294967040  ;;  %v125_v0 = vlaneseq  ;;  %v945_v1 = vmov 1966171168   ;;  %v103_v8 = vld [vmem:[#allocation2] sm:$0xff]  ;;  %v104_v15 = vld [vmem:[#allocation8] sm:$0xff] }
  0x4b   :  { %v123_v2 = vunpack.c.l.s4 %v945_v1  ;;  %v121_v11 = vcombine.high %v103_v8, %v103_v8  ;;  %vm218_vm0 = vcmask 130048   ;;  %v106_v20 = vld [vmem:[#allocation8 + $0x10] sm:$0xff]  ;;  %v105_v21 = vld [vmem:[#allocation8 + $0x8] sm:$0xff]  ;;  %v108_v27 = vld [vmem:[#allocation8 + $0x20] sm:$0xff]  ;;  %vm285_vm1 = vcmask 1041409   ;;  %s949_s29 = smov [#allocation13]  }
  0x4c   :  { %v1017_v3 = vshrl.u32 %v125_v0, 7  ;;  %v252_v4 = vand.u32 127, %v125_v0  ;;  %v107_v28 = vld [vmem:[#allocation8 + $0x18] sm:$0xff]  ;;  %v109_v37 = vld [vmem:[#allocation8 + $0x28] sm:$0xff]  ;;  %v110_v44 = vld [vmem:[#allocation8 + $0x30] sm:$0xff]  ;;  %vm287_vm2 = vcmask 1042434  }
  0x4d   :  { %v124_v5 = vunpack.c.0.s8 %v123_v2  ;;  %v111_v48 = vld [vmem:[#allocation8 + $0x38] sm:$0xff]  ;;  %vm289_vm3 = vcmask 1043459   ;;  %vm291_vm4 = vcmask 1044484   ;;  %vm293_vm5 = vcmask 1045509   ;;  %s715_s30 = sshll.u32 %s949_s29, 4  ;;  %s716_s30 = int_to_ptr.vmem [resolvable:$true] %s715_s30 }
  0x4e   :  { %v1020_v6 = vsub.s32 %v252_v4, %v1017_v3  ;;  %v1024_v10 = vsub.s32 0, %v1017_v3  ;;  %vm295_vm6 = vcmask 1046534   ;;  %vm297_vm7 = vcmask 1047559   ;;  %s907_s8 = scalar_lea.vmem %s716_s30, 128  ;;  %p912_p3 = scmp.lt.s32.totalorder %s716_s30, %s716_s30 }
  0x4f   :  { %v127_v7 = vsub.s32 %v124_v5, %v1017_v3  ;;  %vm300_vm8 = vcmask 64512   ;;  %vm948_vm9 = vmmov 0   ;;  %p908_p2 = scmp.ne.s32.totalorder %s716_s30, %s907_s8  ;;  %p913_p4 = scmp.lt.s32.totalorder %s907_s8, %s907_s8 }
  0x51   :  { %v128_v9 = vrot.slane %v103_v8, %v127_v7  ;;  %v135_v14 = vrot.slane %v121_v11, %v127_v7  ;;  %p914_p5 = por %p913_p4, %p912_p3 }
  0x53   :  { %v144_v12 = vrot.slane %v128_v9, %v127_v7  ;;  %v136_v13 = vcombine.high %v128_v9, %v128_v9  ;;  %v151_v19 = vrot.slane %v135_v14, %v127_v7  ;;  %v137_v22 = vcombine.high %v135_v14, %v135_v14  ;;  %p915_p6 = pnand %p914_p5, %p908_p2 }
  0x55   :  { %v173_v16 = vrot.slane %v144_v12, %v1024_v10  ;;  %v166_v17 = vcombine.high %v144_v12, %v144_v12  ;;  %v158_v18 = vrot.slane %v136_v13, %v127_v7  ;;  %v189_v29 = vrot.slane %v151_v19, %v1024_v10 }
  0x56   :  { %v165_v30 = vrot.slane %v137_v22, %v127_v7  ;;  %v167_v31 = vcombine.high %v151_v19, %v151_v19  ;;  %v311_v19 = vsub.s32 1, %v1017_v3 }
  0x57   :  { %v210_v23 = vmul.f32 %v173_v16, %v104_v15  ;;  %v181_v24 = vrot.slane %v166_v17, %v1024_v10  ;;  %v177_v25 = vrot.slane %v158_v18, %v1024_v10  ;;  %v168_v26 = vcombine.high %v158_v18, %v158_v18 }
  0x58   :  { %v214_v36 = vmul.f32 %v189_v29, %v108_v27  ;;  %v193_v38 = vrot.slane %v165_v30, %v1024_v10  ;;  %v169_v39 = vcombine.high %v165_v30, %v165_v30  ;;  %v197_v43 = vrot.slane %v167_v31, %v1024_v10 }
  0x59   :  { %v219_v32 = vsel %vm218_vm0, %v210_v23, 0.0  ;;  %v212_v33 = vmul.f32 %v181_v24, %v106_v20  ;;  %v211_v34 = vmul.f32 %v177_v25, %v105_v21  ;;  %v185_v35 = vrot.slane %v168_v26, %v1024_v10 }
  0x5a   :  { %220 = vadd.xlane.f32.xlu0 %v219_v32  ;;  %v215_v46 = vmul.f32 %v193_v38, %v109_v37  ;;  %v201_v47 = vrot.slane %v169_v39, %v1024_v10  ;;  %v231_v49 = vsel %vm218_vm0, %v214_v36, 0.0  ;;  %v216_v50 = vmul.f32 %v197_v43, %v110_v44 }
  0x5b   :  { %v225_v40 = vsel %vm218_vm0, %v212_v33, 0.0  ;;  %v222_v41 = vsel %vm218_vm0, %v211_v34, 0.0  ;;  %v213_v42 = vmul.f32 %v185_v35, %v107_v28  ;;  %v946_v18 = vmov 0  }
  0x5c   :  { %226 = vadd.xlane.f32.xlu1 %v225_v40  ;;  %v234_v51 = vsel %vm218_vm0, %v215_v46, 0.0  ;;  %v217_v52 = vmul.f32 %v201_v47, %v111_v48  ;;  %v237_v53 = vsel %vm218_vm0, %v216_v50, 0.0  ;;  %753 = vset.pattern.permute.xlu0 %v946_v18  ;;  %v315_v20 = vsub.s32 2, %v1017_v3 }
  0x5d   :  { %v228_v45 = vsel %vm218_vm0, %v213_v42, 0.0  ;;  %752 = vset.pattern.permute.xlu1 %v946_v18  ;;  %v319_v21 = vsub.s32 3, %v1017_v3  ;;  %v323_v26 = vsub.s32 4, %v1017_v3  ;;  %v327_v33 = vsub.s32 5, %v1017_v3 }
  0x5e   :  { %223 = vadd.xlane.f32.xlu0 %v222_v41  ;;  %v240_v54 = vsel %vm218_vm0, %v217_v52, 0.0  ;;  %v331_v37 = vsub.s32 6, %v1017_v3  ;;  %v335_v41 = vsub.s32 7, %v1017_v3 }
  0x60   :  { %229 = vadd.xlane.f32.xlu1 %v228_v45 }
  0x62   :  { %232 = vadd.xlane.f32.xlu0 %v231_v49 }
  0x64   :  { %235 = vadd.xlane.f32.xlu1 %v234_v51 }
  0x66   :  { %238 = vadd.xlane.f32.xlu0 %v237_v53 }
  0x68   :  { %241 = vadd.xlane.f32.xlu1 %v240_v54 }
  0xe3   :  { %v221_v55 = vpop.xlane.xlu0 %220 }
  0xe4   :  { %v256_v58 = vrot.slane %v221_v55, %v1020_v6 }
  0xe5   :  { %v227_v56 = vpop.xlane.xlu1 %226 }
  0xe6   :  { %v264_v60 = vrot.slane %v227_v56, %v1020_v6 }
  0xe7   :  { %v224_v57 = vpop.xlane.xlu0 %223 }
  0xe8   :  { %v260_v59 = vrot.slane %v224_v57, %v1020_v6 }
  0xe9   :  { %v230_v61 = vpop.xlane.xlu1 %229 }
  0xea   :  { %v286_v62 = vsel %vm285_vm1, %v260_v59, %v256_v58  ;;  %v268_v63 = vrot.slane %v230_v61, %v1020_v6 }
  0xeb   :  { %v288_v0 = vsel %vm287_vm2, %v264_v60, %v286_v62  ;;  %v233_v1 = vpop.xlane.xlu0 %232 }
  0xec   :  { %v290_v2 = vsel %vm289_vm3, %v268_v63, %v288_v0  ;;  %v272_v4 = vrot.slane %v233_v1, %v1020_v6 }
  0xed   :  { %v236_v5 = vpop.xlane.xlu1 %235 }
  0xee   :  { %v292_v7 = vsel %vm291_vm4, %v272_v4, %v290_v2  ;;  %v276_v8 = vrot.slane %v236_v5, %v1020_v6 }
  0xef   :  { %v239_v9 = vpop.xlane.xlu0 %238 }
  0xf0   :  { %v280_v11 = vrot.slane %v239_v9, %v1020_v6  ;;  %v294_v12 = vsel %vm293_vm5, %v276_v8, %v292_v7 }
  0xf1   :  { %v242_v13 = vpop.xlane.xlu1 %241 }
  0xf2   :  { %v284_v14 = vrot.slane %v242_v13, %v1020_v6  ;;  %v296_v15 = vsel %vm295_vm6, %v280_v11, %v294_v12 }
  0xf4   :  { %v298_v16 = vsel %vm297_vm7, %v284_v14, %v296_v15 }
  0xf5   :  { %v301_v17 = vsel %vm300_vm8, %v298_v16, -inf }
  0xf6   :  { %302 = vmax.xlane.f32.xlu0 %v301_v17 }
 0x17f   :  { %v303_v22 = vpop.xlane.xlu0 %302 }
 0x180   :  { %v308_v23 = vrot.slane %v303_v22, %v1024_v10  ;;  %v312_v24 = vrot.slane %v303_v22, %v311_v19  ;;  %v316_v25 = vrot.slane %v303_v22, %v315_v20  ;;  %v320_v27 = vrot.slane %v303_v22, %v319_v21 }
 0x181   :  { %v324_v34 = vrot.slane %v303_v22, %v323_v26  ;;  %v328_v38 = vrot.slane %v303_v22, %v327_v33  ;;  %v332_v42 = vrot.slane %v303_v22, %v331_v37  ;;  %v336_v45 = vrot.slane %v303_v22, %v335_v41 }
 0x182   :  { %v345_v28 = vsub.f32 %v221_v55, %v308_v23  ;;  %v346_v29 = vsub.f32 %v224_v57, %v312_v24  ;;  %v347_v30 = vsub.f32 %v227_v56, %v316_v25  ;;  %v348_v35 = vsub.f32 %v230_v61, %v320_v27 }
 0x183   :  { %v349_v39 = vsub.f32 %v233_v1, %v324_v34  ;;  %v350_v43 = vsub.f32 %v236_v5, %v328_v38  ;;  %v351_v46 = vsub.f32 %v239_v9, %v332_v42  ;;  %v352_v50 = vsub.f32 %v242_v13, %v336_v45 }
 0x184   :  { %v353_v31 = vmul.f32 1.442695, %v345_v28  ;;  %v355_v32 = vmul.f32 1.442695, %v346_v29  ;;  %v357_v36 = vmul.f32 1.442695, %v347_v30 }
 0x185   :  { %v359_v40 = vmul.f32 1.442695, %v348_v35  ;;  %v361_v44 = vmul.f32 1.442695, %v349_v39  ;;  %v363_v47 = vmul.f32 1.442695, %v350_v43 }
 0x186   :  { %755 = vpow2.f32 %v353_v31  ;;  %v365_v51 = vmul.f32 1.442695, %v351_v46  ;;  %v367_v53 = vmul.f32 1.442695, %v352_v50  ;;  %v947_v45 = vmov 0.0   ;;  %v625_v46 = vld [vmem:[#allocation11] sm:$0xff] }
 0x187   :  { %757 = vpow2.f32 %v355_v32  ;;  %732 = vmatprep.subr.mxu0 %v947_v45  ;;  %736 = vmatprep.mubr.msk.f32.mxu0 %vm948_vm9, %v947_v45  ;;  %v112_v50 = vld [vmem:[#allocation7] sm:$0xff] }
 0x188   :  { %759 = vpow2.f32 %v357_v36 }
 0x189   :  { %761 = vpow2.f32 %v359_v40 }
 0x18a   :  { %763 = vpow2.f32 %v361_v44  ;;  %v626_v44 = vld [vmem:[#allocation11 + $0x8] sm:$0xff] }
 0x18b   :  { %765 = vpow2.f32 %v363_v47  ;;  %733 = vmatpush3.msra.mxu0 %v626_v44 }
 0x18c   :  { %767 = vpow2.f32 %v365_v51  ;;  %734 = vmatprep.subr.mxu0 %v947_v45  ;;  %v114_v51 = vld [vmem:[#allocation7 + $0x10] sm:$0xff] }
 0x18d   :  { %769 = vpow2.f32 %v367_v53  ;;  %735 = vmatpush3.msra.mxu0 %v625_v46 }
 0x193   :  { %v756_v48 = vpop.eup %755 }
 0x194   :  { %v1080_v49 = vpop.eup %757  ;;  %378 = vperm.xlu1 %752, %v756_v48  }
 0x195   :  { %381 = vperm.xlu0 %753, %v1080_v49   ;;  %v1083_v52 = vpop.eup %759 }
 0x196   :  { %v1086_v54 = vpop.eup %761 }
 0x197   :  { %v1089_v55 = vpop.eup %763 }
 0x198   :  { %384 = vperm.xlu1 %752, %v1083_v52   ;;  %v1092_v56 = vpop.eup %765 }
 0x199   :  { %v1095_v57 = vpop.eup %767 }
 0x19a   :  { %v1098_v58 = vpop.eup %769 }
 0x19c   :  { %387 = vperm.xlu1 %752, %v1086_v54  }
 0x1a0   :  { %390 = vperm.xlu1 %752, %v1089_v55  }
 0x1a4   :  { %393 = vperm.xlu1 %752, %v1092_v56  }
 0x1a8   :  { %396 = vperm.xlu1 %752, %v1095_v57  }
 0x1ac   :  { %399 = vperm.xlu1 %752, %v1098_v58  }
 0x20f   :  { %v379_v59 = vpop.permute.xlu1 %378 }
 0x210   :  { %v382_v63 = vpop.permute.xlu0 %381  ;;  %v404_v2 = vrot.slane %v379_v59, %v1020_v6 }
 0x211   :  { %v408_v1 = vrot.slane %v382_v63, %v1020_v6  ;;  %v116_v63 = vld [vmem:[#allocation7 + $0x20] sm:$0xff] }
 0x213   :  { %v385_v60 = vpop.permute.xlu1 %384  ;;  %v433_v9 = vsel %vm285_vm1, %v408_v1, %v404_v2 }
 0x214   :  { %v412_v4 = vrot.slane %v385_v60, %v1020_v6 }
 0x216   :  { %v434_v12 = vsel %vm287_vm2, %v412_v4, %v433_v9  ;;  %v117_v9 = vld [vmem:[#allocation7 + $0x28] sm:$0xff] }
 0x217   :  { %v388_v61 = vpop.permute.xlu1 %387 }
 0x218   :  { %v416_v5 = vrot.slane %v388_v61, %v1020_v6 }
 0x21a   :  { %v435_v14 = vsel %vm289_vm3, %v416_v5, %v434_v12 }
 0x21b   :  { %v391_v62 = vpop.permute.xlu1 %390 }
 0x21c   :  { %v420_v7 = vrot.slane %v391_v62, %v1020_v6 }
 0x21e   :  { %v436_v15 = vsel %vm291_vm4, %v420_v7, %v435_v14 }
 0x21f   :  { %v394_v0 = vpop.permute.xlu1 %393 }
 0x220   :  { %v424_v11 = vrot.slane %v394_v0, %v1020_v6 }
 0x222   :  { %v437_v17 = vsel %vm293_vm5, %v424_v11, %v436_v15 }
 0x223   :  { %v397_v8 = vpop.permute.xlu1 %396 }
 0x224   :  { %v428_v13 = vrot.slane %v397_v8, %v1020_v6 }
 0x226   :  { %v438_v22 = vsel %vm295_vm6, %v428_v13, %v437_v17 }
 0x227   :  { %v400_v16 = vpop.permute.xlu1 %399 }
 0x228   :  { %v432_v18 = vrot.slane %v400_v16, %v1020_v6 }
 0x22a   :  { %v439_v23 = vsel %vm297_vm7, %v432_v18, %v438_v22 }
 0x22b   :  { %v441_v24 = vsel %vm300_vm8, %v439_v23, 0.0  ;;  %v118_v23 = vld [vmem:[#allocation7 + $0x30] sm:$0xff] }
 0x22c   :  { %442 = vadd.xlane.f32.xlu1 %v441_v24 }
 0x2b5   :  { %v443_v25 = vpop.xlane.xlu1 %442 }
 0x2b6   :  { %v448_v27 = vrot.slane %v443_v25, %v1024_v10  ;;  %v452_v28 = vrot.slane %v443_v25, %v311_v19  ;;  %v456_v29 = vrot.slane %v443_v25, %v315_v20  ;;  %v460_v6 = vrot.slane %v443_v25, %v319_v21 }
 0x2b7   :  { %v464_v30 = vrot.slane %v443_v25, %v323_v26  ;;  %v468_v10 = vrot.slane %v443_v25, %v327_v33  ;;  %v472_v20 = vrot.slane %v443_v25, %v331_v37  ;;  %v476_v26 = vrot.slane %v443_v25, %v335_v41 }
 0x2b8   :  { %771 = vrcp.f32 %v448_v27 }
 0x2b9   :  { %773 = vrcp.f32 %v452_v28 }
 0x2ba   :  { %775 = vrcp.f32 %v456_v29 }
 0x2bb   :  { %777 = vrcp.f32 %v460_v6 }
 0x2bc   :  { %779 = vrcp.f32 %v464_v30 }
 0x2bd   :  { %781 = vrcp.f32 %v468_v10 }
 0x2be   :  { %783 = vrcp.f32 %v472_v20 }
 0x2bf   :  { %785 = vrcp.f32 %v476_v26 }
 0x2c5   :  { %v772_v31 = vpop.eup %771 }
 0x2c6   :  { %v486_v32 = vmul.f32 %v772_v31, %v756_v48  ;;  %v774_v19 = vpop.eup %773  ;;  %v113_v48 = vld [vmem:[#allocation7 + $0x8] sm:$0xff] }
 0x2c7   :  { %v488_v34 = vmul.f32 %v774_v19, %v1080_v49  ;;  %v776_v21 = vpop.eup %775  ;;  %v119_v19 = vld [vmem:[#allocation7 + $0x38] sm:$0xff] }
 0x2c8   :  { %503 = vperm.xlu0 %753, %v486_v32   ;;  %v490_v35 = vmul.f32 %v776_v21, %v1083_v52  ;;  %v778_v36 = vpop.eup %777 }
 0x2c9   :  { %v492_v33 = vmul.f32 %v778_v36, %v1086_v54  ;;  %v780_v38 = vpop.eup %779 }
 0x2ca   :  { %v494_v37 = vmul.f32 %v780_v38, %v1089_v55  ;;  %v782_v39 = vpop.eup %781 }
 0x2cb   :  { %v496_v40 = vmul.f32 %v782_v39, %v1092_v56  ;;  %v784_v42 = vpop.eup %783  ;;  %v115_v56 = vld [vmem:[#allocation7 + $0x18] sm:$0xff] }
 0x2cc   :  { %508 = vperm.xlu0 %753, %v488_v34   ;;  %v498_v3 = vmul.f32 %v784_v42, %v1095_v57  ;;  %v786_v41 = vpop.eup %785 }
 0x2cd   :  { %v500_v43 = vmul.f32 %v786_v41, %v1098_v58 }
 0x2d0   :  { %513 = vperm.xlu0 %753, %v490_v35  }
 0x2d4   :  { %518 = vperm.xlu0 %753, %v492_v33  }
 0x2d8   :  { %523 = vperm.xlu0 %753, %v494_v37  }
 0x2dc   :  { %528 = vperm.xlu0 %753, %v496_v40  }
 0x2e0   :  { %533 = vperm.xlu0 %753, %v498_v3  }
 0x2e4   :  { %538 = vperm.xlu0 %753, %v500_v43  }
 0x343   :  { %v504_v47 = vpop.permute.xlu0 %503 }
 0x344   :  { %v541_v54 = vmul.f32 %v504_v47, %v112_v50 }
 0x346   :  { %v549_v60 = vsel %vm218_vm0, %v541_v54, 0.0 }
 0x347   :  { %v509_v49 = vpop.permute.xlu0 %508  ;;  %v550_v2 = vrot.slane %v549_v60, 4 }
 0x348   :  { %v542_v52 = vmul.f32 %v509_v49, %v113_v48 }
 0x349   :  { %v551_v13 = vadd.f32 %v550_v2, %v549_v60 }
 0x34a   :  { %v556_v57 = vsel %vm218_vm0, %v542_v52, 0.0 }
 0x34b   :  { %v514_v53 = vpop.permute.xlu0 %513  ;;  %v557_v62 = vrot.slane %v556_v57, 4  ;;  %v552_v27 = vrot.slane %v551_v13, 2 }
 0x34c   :  { %v543_v55 = vmul.f32 %v514_v53, %v114_v51 }
 0x34d   :  { %v558_v8 = vadd.f32 %v557_v62, %v556_v57  ;;  %v553_v21 = vadd.f32 %v552_v27, %v551_v13  ;;  %v727_v13 = vld [vmem:[%s1168_s6] ss:$0 sm:$0xff] }
 0x34e   :  { %v563_v58 = vsel %vm218_vm0, %v543_v55, 0.0 }
 0x34f   :  { %v519_v59 = vpop.permute.xlu0 %518  ;;  %v564_v0 = vrot.slane %v563_v58, 4  ;;  %v559_v18 = vrot.slane %v558_v8, 2  ;;  %v554_v43 = vrot.slane %v553_v21, 1 }
 0x350   :  { %v544_v61 = vmul.f32 %v519_v59, %v115_v56 }
 0x351   :  { %v565_v11 = vadd.f32 %v564_v0, %v563_v58  ;;  %v560_v10 = vadd.f32 %v559_v18, %v558_v8  ;;  %v555_v53 = vadd.f32 %v554_v43, %v553_v21 }
 0x352   :  { %v570_v1 = vsel %vm218_vm0, %v544_v61, 0.0 }
 0x353   :  { %v571_v4 = vrot.slane %v570_v1, 4  ;;  %v524_v5 = vpop.permute.xlu0 %523  ;;  %v566_v24 = vrot.slane %v565_v11, 2  ;;  %v561_v39 = vrot.slane %v560_v10, 1 }
 0x354   :  { %v545_v7 = vmul.f32 %v524_v5, %v116_v63  ;;  %v605_v5 = vld [vmem:[#allocation5] sm:$0xff] }
 0x355   :  { %v572_v14 = vadd.f32 %v571_v4, %v570_v1  ;;  %v567_v20 = vadd.f32 %v566_v24, %v565_v11  ;;  %v562_v48 = vadd.f32 %v561_v39, %v560_v10 }
 0x356   :  { %v577_v12 = vsel %vm218_vm0, %v545_v7, 0.0 }
 0x357   :  { %v578_v15 = vrot.slane %v577_v12, 4  ;;  %v529_v16 = vpop.permute.xlu0 %528  ;;  %v573_v28 = vrot.slane %v572_v14, 2  ;;  %v568_v3 = vrot.slane %v567_v20, 1  ;;  %v614_v58 = vsel %vm285_vm1, %v562_v48, %v555_v53 }
 0x358   :  { %v546_v17 = vmul.f32 %v529_v16, %v117_v9  ;;  %v623_v9 = vld [vmem:[#allocation10] sm:$0xff] }
 0x359   :  { %v579_v22 = vadd.f32 %v578_v15, %v577_v12  ;;  %v574_v26 = vadd.f32 %v573_v28, %v572_v14  ;;  %v569_v52 = vadd.f32 %v568_v3, %v567_v20 }
 0x35a   :  { %v584_v25 = vsel %vm218_vm0, %v546_v17, 0.0 }
 0x35b   :  { %v585_v29 = vrot.slane %v584_v25, 4  ;;  %v534_v6 = vpop.permute.xlu0 %533  ;;  %v580_v30 = vrot.slane %v579_v22, 2  ;;  %v575_v44 = vrot.slane %v574_v26, 1  ;;  %v615_v61 = vsel %vm287_vm2, %v569_v52, %v614_v58 }
 0x35c   :  { %v547_v31 = vmul.f32 %v534_v6, %v118_v23 }
 0x35d   :  { %v586_v32 = vadd.f32 %v585_v29, %v584_v25  ;;  %v581_v38 = vadd.f32 %v580_v30, %v579_v22  ;;  %v576_v54 = vadd.f32 %v575_v44, %v574_v26 }
 0x35e   :  { %v591_v34 = vsel %vm218_vm0, %v547_v31, 0.0 }
 0x35f   :  { %v587_v35 = vrot.slane %v586_v32, 2  ;;  %v592_v36 = vrot.slane %v591_v34, 4  ;;  %v539_v33 = vpop.permute.xlu0 %538  ;;  %v582_v47 = vrot.slane %v581_v38, 1  ;;  %v616_v63 = vsel %vm289_vm3, %v576_v54, %v615_v61 }
 0x360   :  { %v548_v37 = vmul.f32 %v539_v33, %v119_v19 }
 0x361   :  { %v588_v40 = vadd.f32 %v587_v35, %v586_v32  ;;  %v593_v42 = vadd.f32 %v592_v36, %v591_v34  ;;  %v583_v57 = vadd.f32 %v582_v47, %v581_v38 }
 0x362   :  { %v598_v41 = vsel %vm218_vm0, %v548_v37, 0.0 }
 0x363   :  { %v594_v45 = vrot.slane %v593_v42, 2  ;;  %v599_v46 = vrot.slane %v598_v41, 4  ;;  %v589_v49 = vrot.slane %v588_v40, 1  ;;  %v617_v1 = vsel %vm291_vm4, %v583_v57, %v616_v63 }
 0x365   :  { %v595_v50 = vadd.f32 %v594_v45, %v593_v42  ;;  %v600_v51 = vadd.f32 %v599_v46, %v598_v41  ;;  %v590_v59 = vadd.f32 %v589_v49, %v588_v40 }
 0x367   :  { %v596_v55 = vrot.slane %v595_v50, 1  ;;  %v601_v56 = vrot.slane %v600_v51, 2  ;;  %v618_v2 = vsel %vm293_vm5, %v590_v59, %v617_v1 }
 0x369   :  { %v602_v60 = vadd.f32 %v601_v56, %v600_v51  ;;  %v597_v62 = vadd.f32 %v596_v55, %v595_v50 }
 0x36b   :  { %v603_v0 = vrot.slane %v602_v60, 1  ;;  %v619_v7 = vsel %vm295_vm6, %v597_v62, %v618_v2 }
 0x36d   :  { %v604_v4 = vadd.f32 %v603_v0, %v602_v60 }
 0x36f   :  { %v620_v8 = vsel %vm297_vm7, %v604_v4, %v619_v7 }
 0x370   :  { %v622_v11 = vadd.f32 %v620_v8, %v605_v5 }
 0x372   :  { %v624_v12 = vmul.f32 %v623_v9, %v622_v11 }
 0x374   :  { %737 = vmatmul.mubr.msk.f32.vlgmr.msra.gmra.mxu0 %vm218_vm0, %v624_v12 }
 0x434   :  { %v703_v14 = vpop.f32.mrf.mxu0 }
 0x435   :  { %v704_v15 = vadd.f32 %v727_v13, %v703_v14 }
 0x436   :  { %v738_v16 = vpop.f32.mrf.mxu0 }
 0x437   :  { %v707_v17 = vmax.f32 %v704_v15, 0.0 }
 0x439   :  { %708 = vst.msk [vmem:[#allocation13] sm:$0xff] %vm218_vm0, %v707_v17 }
 0x43a   :  { %918 = shalt.err (!%p915_p6)
}
 0x43b   :  { %718 = dma.vmem_to_hbm [thread:$0]  %s716_s30, 128, %s1169_s7, [#allocation4]  }
 0x43c   :  { %935 = dma.done.wait [#allocation4], 128  }
 0x43d   :  { %936 = vsyncadd [#allocation4], 4294967168 }
 0x43e   :  { %722 = vsyncpa [#allocation3], 1 }
 0x43f   :  { %723 = vsyncpa [#allocation6], 1 }
 0x440   :  { %724 = vsyncpa [#allocation9], 1 }
 0x441   :  { %725 = vsyncpa [#allocation12], 1 }
 0x442   :  { %726 = vsyncpa [#allocation4], 1 }

</bundles_post_ra>
